<compile_context>
chip_gen: v7x
topology: tpu7x:2x2x1
jax: 0.10.0
libtpu: 0.0.40
codegen_flags: <defaults>
</compile_context>

<pallas_src>
import functools

import jax
import jax.numpy as jnp
from jax import lax
from jax.experimental import pallas as pl
from jax.experimental.pallas import tpu as pltpu


# ---------------------------------------------------------------------------
# Helpers
# ---------------------------------------------------------------------------

_SELU_ALPHA = 1.6732632423543772
_SELU_SCALE = 1.0507009873554805


def _selu(v):
    # Guard exp() on the discarded branch so large positive v never makes inf
    # (also keeps garbage rows from ragged boundary blocks finite).
    return _SELU_SCALE * jnp.where(
        v > 0.0, v, _SELU_ALPHA * (jnp.exp(jnp.minimum(v, 0.0)) - 1.0))


def _relu6(v):
    return jnp.clip(v, 0.0, 6.0)


def _round_up(n, m):
    return ((n + m - 1) // m) * m


def _pick_batch_tile(B: int) -> int:
    """Rows per grid step: multiple of 8, capped at 2048, and >= 2 grid steps
    whenever B > 8 so v7x's two TensorCores both get work."""
    if B <= 8:
        return B  # single tile; block dim == full batch dim (always legal)
    return min(2048, _round_up(pl.cdiv(B, 2), 8))


# ---------------------------------------------------------------------------
# Kernel
# ---------------------------------------------------------------------------

def _make_dsm_kernel(n_hidden_layers: int, out_dim: int):
    """Fused DSM forward kernel for a fixed number of embedding layers.

    Ref layout:
      x_ref,
      (w_i, b_i) * n_hidden_layers,     -- embedding (Linear + ReLU6)
      w_heads, b_heads, offsets,        -- fused [shapeg | scaleg | gate] head
      out_ref                           -- (TB, P) fused lane-dense bf16 output
    """

    def kernel(*refs):
        idx = 0
        x_ref = refs[idx]; idx += 1

        h = x_ref[...]
        for _ in range(n_hidden_layers):
            w = refs[idx][...]; idx += 1
            b = refs[idx][...]; idx += 1
            h = _relu6(jnp.dot(h, w, preferred_element_type=jnp.float32) + b)

        w_heads = refs[idx][...]; idx += 1
        b_heads = refs[idx][...]; idx += 1
        offsets = refs[idx][...]; idx += 1
        out_ref = refs[idx]

        # One lane-dense matmul for all three heads (+ lane padding columns).
        # Gate weight columns were pre-scaled by 1/temp in the wrapper and its
        # bias/offset are zero, so the gate result is just `z`.
        z = jnp.dot(h, w_heads, preferred_element_type=jnp.float32) + b_heads

        # shape/scale segments: clamp(SELU(z) + learned offset, -10, 10)
        heads = jnp.clip(_selu(z) + offsets, -10.0, 10.0)

        # (1, P) column mask, broadcast by jnp.where (no (TB, P) iota per tile).
        col = lax.broadcasted_iota(jnp.int32, (1, z.shape[-1]), 1)
        is_gate = col >= 2 * out_dim     # gate slice + padding (discarded later)

        out_ref[...] = jnp.where(is_gate, z, heads).astype(out_ref.dtype)

    return kernel


# ---------------------------------------------------------------------------
# Parameter setup + wrapper
# ---------------------------------------------------------------------------

def init_dsm_params(key, inputdim, k, layers, risks):
    """Deterministic parameter init matching the module's shapes.

    Linear weights are stored transposed as (in, out); biases as (1, out).
    """
    params = {}
    dims = [inputdim] + list(layers)
    keys = jax.random.split(key, 2 * len(layers) + 6)
    ki = 0

    emb = []
    for i in range(len(layers)):
        fan_in = dims[i]
        bound = 1.0 / jnp.sqrt(fan_in)
        w = jax.random.uniform(keys[ki], (dims[i], dims[i + 1]), jnp.float32,
                               -bound, bound); ki += 1
        b = jax.random.uniform(keys[ki], (1, dims[i + 1]), jnp.float32,
                               -bound, bound); ki += 1
        emb.append((w, b))
    params["embedding"] = emb

    lastdim = layers[-1] if len(layers) > 0 else inputdim
    out = k * risks
    bound = 1.0 / jnp.sqrt(lastdim)

    params["gate_w"] = jax.random.uniform(keys[ki], (lastdim, out), jnp.float32,
                                          -bound, bound); ki += 1
    params["scaleg_w"] = jax.random.uniform(keys[ki], (lastdim, out), jnp.float32,
                                            -bound, bound); ki += 1
    params["scaleg_b"] = jax.random.uniform(keys[ki], (1, out), jnp.float32,
                                            -bound, bound); ki += 1
    params["shapeg_w"] = jax.random.uniform(keys[ki], (lastdim, out), jnp.float32,
                                            -bound, bound); ki += 1
    params["shapeg_b"] = jax.random.uniform(keys[ki], (1, out), jnp.float32,
                                            -bound, bound); ki += 1

    # nn.Parameter(-torch.ones(k * risks))
    params["shape_p"] = -jnp.ones((1, out), jnp.float32)
    params["scale_p"] = -jnp.ones((1, out), jnp.float32)
    return params


@functools.partial(jax.jit, static_argnames=("k", "risks", "temp"))
def dsm_forward(x, params, *, k, risks, temp):
    """Runs the fused Pallas kernel; returns list of (shape, scale, gate) per risk."""
    B, inputdim = x.shape
    out = k * risks
    P = _round_up(3 * out, 128)          # lane-dense fused output width
    n_layers = len(params["embedding"])

    # --- fuse the three head weights / biases / offsets (wrapper-side glue) ---
    zeros_out = jnp.zeros((1, out), jnp.float32)
    w_heads = jnp.concatenate(
        [params["shapeg_w"], params["scaleg_w"],
         params["gate_w"] * (1.0 / temp)],          # fold /temp into gate weights
        axis=1)
    w_heads = jnp.pad(w_heads, ((0, 0), (0, P - 3 * out)))
    b_heads = jnp.concatenate(
        [params["shapeg_b"], params["scaleg_b"], zeros_out], axis=1)
    b_heads = jnp.pad(b_heads, ((0, 0), (0, P - 3 * out)))
    offsets = jnp.concatenate(
        [params["shape_p"], params["scale_p"], zeros_out], axis=1)
    offsets = jnp.pad(offsets, ((0, 0), (0, P - 3 * out)))

    # --- batch tiling: no input padding; ragged boundary block is masked ---
    TB = _pick_batch_tile(B)
    grid = (pl.cdiv(B, TB),)

    kernel = _make_dsm_kernel(n_layers, out)

    inputs = [x]
    in_specs = [pl.BlockSpec((TB, inputdim), lambda i: (i, 0))]
    for w, b in params["embedding"]:
        inputs += [w, b]
        in_specs += [pl.BlockSpec(w.shape, lambda i: (0, 0)),
                     pl.BlockSpec(b.shape, lambda i: (0, 0))]
    for arr in (w_heads, b_heads, offsets):
        inputs.append(arr)
        in_specs.append(pl.BlockSpec(arr.shape, lambda i: (0, 0)))

    fused = pl.pallas_call(
        kernel,
        out_shape=jax.ShapeDtypeStruct((B, P), jnp.bfloat16),
        grid=grid,
        in_specs=in_specs,
        out_specs=pl.BlockSpec((TB, P), lambda i: (i, 0)),
        compiler_params=pltpu.CompilerParams(
            dimension_semantics=("parallel",)),
    )(*inputs)

    # One narrow read of the 3*out real columns, cast back to f32; the per-risk
    # views below are tiny contiguous column slices of this small array.
    head = fused[:, :3 * out].astype(jnp.float32)
    sh = head[:, 0:out]
    sc = head[:, out:2 * out]
    g = head[:, 2 * out:3 * out]

    # Per-risk slicing (glue, matches the PyTorch loop over risks).
    return [(sh[:, i * k:(i + 1) * k],
             sc[:, i * k:(i + 1) * k],
             g[:, i * k:(i + 1) * k]) for i in range(risks)]


# ---------------------------------------------------------------------------
# Pure-JAX reference (for a sanity check)
# ---------------------------------------------------------------------------

def dsm_forward_ref(x, params, *, k, risks, temp):
    h = x
    for w, b in params["embedding"]:
        h = _relu6(h @ w + b)
    sh = jnp.clip(_selu(h @ params["shapeg_w"] + params["shapeg_b"]) + params["shape_p"],
                  -10.0, 10.0)
    sc = jnp.clip(_selu(h @ params["scaleg_w"] + params["scaleg_b"]) + params["scale_p"],
                  -10.0, 10.0)
    g = (h @ params["gate_w"]) / temp
    return [(sh[:, i * k:(i + 1) * k], sc[:, i * k:(i + 1) * k], g[:, i * k:(i + 1) * k])
            for i in range(risks)]


# ---------------------------------------------------------------------------
# Main
# ---------------------------------------------------------------------------

if __name__ == "__main__":
    # Small config consistent with the module: tabular input, 2-layer MLP embedding.
    inputdim = 16
    layers = (32, 32)
    k = 4
    risks = 2
    temp = 1000.0

    key = jax.random.PRNGKey(0)
    pkey, xkey1, xkey2 = jax.random.split(key, 3)
    params = init_dsm_params(pkey, inputdim, k, layers, risks)

    def _check(x, B):
        got = jax.block_until_ready(
            dsm_forward(x, params, k=k, risks=risks, temp=temp))
        ref = dsm_forward_ref(x, params, k=k, risks=risks, temp=temp)
        for (a_sh, a_sc, a_g), (r_sh, r_sc, r_g) in zip(got, ref):
            assert a_sh.shape == (B, k) and a_sc.shape == (B, k) and a_g.shape == (B, k)
            # bf16 output writeback => relaxed tolerances (~0.2% relative).
            assert jnp.allclose(a_sh, r_sh, rtol=1e-2, atol=2e-5)
            assert jnp.allclose(a_sc, r_sc, rtol=1e-2, atol=2e-5)
            assert jnp.allclose(a_g, r_g, rtol=1e-2, atol=2e-5)

    # Check 1: tiny batch (single grid step, block == full batch).
    x_small = jax.random.normal(xkey1, (8, inputdim), jnp.float32)
    _check(x_small, 8)

    # Check 2: larger batch exercising the grid (2 "parallel" steps, ragged tail).
    x_big = jax.random.normal(xkey2, (1000, inputdim), jnp.float32)
    _check(x_big, 1000)

    print("KERNEL_OK")
</pallas_src>

<mosaic_0001>
module attributes {stable_mosaic.version = 11 : i64} {
  func.func @kernel(%arg0: i32, %arg1: memref<8x16xf32, #tpu.memory_space<vmem>>, %arg2: memref<16x32xf32, #tpu.memory_space<vmem>>, %arg3: memref<1x32xf32, #tpu.memory_space<vmem>>, %arg4: memref<32x32xf32, #tpu.memory_space<vmem>>, %arg5: memref<1x32xf32, #tpu.memory_space<vmem>>, %arg6: memref<32x128xf32, #tpu.memory_space<vmem>>, %arg7: memref<1x128xf32, #tpu.memory_space<vmem>>, %arg8: memref<1x128xf32, #tpu.memory_space<vmem>>, %arg9: memref<8x128xbf16, #tpu.memory_space<vmem>>) attributes {dimension_semantics = [#tpu.dimension_semantics<parallel>], iteration_bounds = array<i64: 1>, scalar_prefetch = 0 : i64, scratch_operands = 0 : i64, tpu.core_type = #tpu.core_type<tc>, window_params = [{transform_indices = @transform_0, window_bounds = array<i64: 8, 16>}, {pipeline_mode = #tpu.pipeline_mode<synchronous>, transform_indices = @transform_1, window_bounds = array<i64: 16, 32>}, {pipeline_mode = #tpu.pipeline_mode<synchronous>, transform_indices = @transform_2, window_bounds = array<i64: 1, 32>}, {pipeline_mode = #tpu.pipeline_mode<synchronous>, transform_indices = @transform_3, window_bounds = array<i64: 32, 32>}, {pipeline_mode = #tpu.pipeline_mode<synchronous>, transform_indices = @transform_4, window_bounds = array<i64: 1, 32>}, {pipeline_mode = #tpu.pipeline_mode<synchronous>, transform_indices = @transform_5, window_bounds = array<i64: 32, 128>}, {pipeline_mode = #tpu.pipeline_mode<synchronous>, transform_indices = @transform_6, window_bounds = array<i64: 1, 128>}, {pipeline_mode = #tpu.pipeline_mode<synchronous>, transform_indices = @transform_7, window_bounds = array<i64: 1, 128>}, {transform_indices = @transform_8, window_bounds = array<i64: 8, 128>}]} {
    %c0 = arith.constant 0 : index
    %c0_0 = arith.constant 0 : index
    %0 = vector.load %arg1[%c0, %c0_0] : memref<8x16xf32, #tpu.memory_space<vmem>>, vector<8x16xf32>
    %c0_1 = arith.constant 0 : index
    %c0_2 = arith.constant 0 : index
    %1 = vector.load %arg2[%c0_1, %c0_2] : memref<16x32xf32, #tpu.memory_space<vmem>>, vector<16x32xf32>
    %c0_3 = arith.constant 0 : index
    %c0_4 = arith.constant 0 : index
    %2 = vector.load %arg3[%c0_3, %c0_4] : memref<1x32xf32, #tpu.memory_space<vmem>>, vector<1x32xf32>
    %cst = arith.constant dense<0.000000e+00> : vector<8x32xf32>
    %3 = tpu.matmul %0, %1, %cst {dimension_numbers = #tpu.dot_dimension_numbers<[1], [0], [0], [1], [0, 0, 1, 1], [], []>} : vector<8x16xf32>, vector<16x32xf32>, vector<8x32xf32> -> vector<8x32xf32>
    %4 = vector.broadcast %2 : vector<1x32xf32> to vector<8x32xf32>
    %5 = arith.addf %3, %4 : vector<8x32xf32>
    %cst_5 = arith.constant 0.000000e+00 : f32
    %cst_6 = arith.constant 6.000000e+00 : f32
    %6 = vector.broadcast %cst_5 : f32 to vector<8x32xf32>
    %7 = arith.maximumf %6, %5 : vector<8x32xf32>
    %8 = vector.broadcast %cst_6 : f32 to vector<8x32xf32>
    %9 = arith.minimumf %8, %7 : vector<8x32xf32>
    %c0_7 = arith.constant 0 : index
    %c0_8 = arith.constant 0 : index
    %10 = vector.load %arg4[%c0_7, %c0_8] : memref<32x32xf32, #tpu.memory_space<vmem>>, vector<32x32xf32>
    %c0_9 = arith.constant 0 : index
    %c0_10 = arith.constant 0 : index
    %11 = vector.load %arg5[%c0_9, %c0_10] : memref<1x32xf32, #tpu.memory_space<vmem>>, vector<1x32xf32>
    %cst_11 = arith.constant dense<0.000000e+00> : vector<8x32xf32>
    %12 = tpu.matmul %9, %10, %cst_11 {dimension_numbers = #tpu.dot_dimension_numbers<[1], [0], [0], [1], [0, 0, 1, 1], [], []>} : vector<8x32xf32>, vector<32x32xf32>, vector<8x32xf32> -> vector<8x32xf32>
    %13 = vector.broadcast %11 : vector<1x32xf32> to vector<8x32xf32>
    %14 = arith.addf %12, %13 : vector<8x32xf32>
    %cst_12 = arith.constant 0.000000e+00 : f32
    %cst_13 = arith.constant 6.000000e+00 : f32
    %15 = vector.broadcast %cst_12 : f32 to vector<8x32xf32>
    %16 = arith.maximumf %15, %14 : vector<8x32xf32>
    %17 = vector.broadcast %cst_13 : f32 to vector<8x32xf32>
    %18 = arith.minimumf %17, %16 : vector<8x32xf32>
    %c0_14 = arith.constant 0 : index
    %c0_15 = arith.constant 0 : index
    %19 = vector.load %arg6[%c0_14, %c0_15] : memref<32x128xf32, #tpu.memory_space<vmem>>, vector<32x128xf32>
    %c0_16 = arith.constant 0 : index
    %c0_17 = arith.constant 0 : index
    %20 = vector.load %arg7[%c0_16, %c0_17] : memref<1x128xf32, #tpu.memory_space<vmem>>, vector<1x128xf32>
    %c0_18 = arith.constant 0 : index
    %c0_19 = arith.constant 0 : index
    %21 = vector.load %arg8[%c0_18, %c0_19] : memref<1x128xf32, #tpu.memory_space<vmem>>, vector<1x128xf32>
    %cst_20 = arith.constant dense<0.000000e+00> : vector<8x128xf32>
    %22 = tpu.matmul %18, %19, %cst_20 {dimension_numbers = #tpu.dot_dimension_numbers<[1], [0], [0], [1], [0, 0, 1, 1], [], []>} : vector<8x32xf32>, vector<32x128xf32>, vector<8x128xf32> -> vector<8x128xf32>
    %23 = vector.broadcast %20 : vector<1x128xf32> to vector<8x128xf32>
    %24 = arith.addf %22, %23 : vector<8x128xf32>
    %cst_21 = arith.constant 0.000000e+00 : f32
    %25 = vector.broadcast %cst_21 : f32 to vector<8x128xf32>
    %26 = arith.cmpf ogt, %24, %25 : vector<8x128xf32>
    %cst_22 = arith.constant 0.000000e+00 : f32
    %27 = vector.broadcast %cst_22 : f32 to vector<8x128xf32>
    %28 = arith.minimumf %24, %27 : vector<8x128xf32>
    %29 = math.exp %28 : vector<8x128xf32>
    %cst_23 = arith.constant 1.000000e+00 : f32
    %30 = vector.broadcast %cst_23 : f32 to vector<8x128xf32>
    %31 = arith.subf %29, %30 : vector<8x128xf32>
    %cst_24 = arith.constant 1.67326319 : f32
    %32 = vector.broadcast %cst_24 : f32 to vector<8x128xf32>
    %33 = arith.mulf %32, %31 : vector<8x128xf32>
    %34 = arith.select %26, %24, %33 : vector<8x128xi1>, vector<8x128xf32>
    %cst_25 = arith.constant 1.05070102 : f32
    %35 = vector.broadcast %cst_25 : f32 to vector<8x128xf32>
    %36 = arith.mulf %35, %34 : vector<8x128xf32>
    %37 = vector.broadcast %21 : vector<1x128xf32> to vector<8x128xf32>
    %38 = arith.addf %36, %37 : vector<8x128xf32>
    %cst_26 = arith.constant -1.000000e+01 : f32
    %cst_27 = arith.constant 1.000000e+01 : f32
    %39 = vector.broadcast %cst_26 : f32 to vector<8x128xf32>
    %40 = arith.maximumf %39, %38 : vector<8x128xf32>
    %41 = vector.broadcast %cst_27 : f32 to vector<8x128xf32>
    %42 = arith.minimumf %41, %40 : vector<8x128xf32>
    %43 = tpu.iota {dimensions = array<i32: 1>} : vector<1x128xi32>
    %c16_i32 = arith.constant 16 : i32
    %44 = vector.broadcast %c16_i32 : i32 to vector<1x128xi32>
    %45 = arith.cmpi sge, %43, %44 : vector<1x128xi32>
    %46 = vector.shape_cast %45 : vector<1x128xi1> to vector<1x128xi1>
    %47 = vector.broadcast %46 : vector<1x128xi1> to vector<8x128xi1>
    %48 = arith.select %47, %24, %42 : vector<8x128xi1>, vector<8x128xf32>
    %49 = arith.truncf %48 : vector<8x128xf32> to vector<8x128xbf16>
    %c0_28 = arith.constant 0 : index
    %c0_29 = arith.constant 0 : index
    %50 = vector.load %arg9[%c0_28, %c0_29] : memref<8x128xbf16, #tpu.memory_space<vmem>>, vector<8x128xbf16>
    tpu.vector_store %arg9[%c0_28, %c0_29], %49 {strides = array<i32>} : memref<8x128xbf16, #tpu.memory_space<vmem>>, vector<8x128xbf16>,
    return
  }
  func.func @transform_0(%arg0: i32) -> (i32, i32) {
    %c0_i32 = arith.constant 0 : i32
    %c0_i32_0 = arith.constant 0 : i32
    return %arg0, %c0_i32 : i32, i32
  }
  func.func @transform_1(%arg0: i32) -> (i32, i32) {
    %c0_i32 = arith.constant 0 : i32
    %c0_i32_0 = arith.constant 0 : i32
    %c0_i32_1 = arith.constant 0 : i32
    return %c0_i32, %c0_i32_0 : i32, i32
  }
  func.func @transform_2(%arg0: i32) -> (i32, i32) {
    %c0_i32 = arith.constant 0 : i32
    %c0_i32_0 = arith.constant 0 : i32
    %c0_i32_1 = arith.constant 0 : i32
    return %c0_i32, %c0_i32_0 : i32, i32
  }
  func.func @transform_3(%arg0: i32) -> (i32, i32) {
    %c0_i32 = arith.constant 0 : i32
    %c0_i32_0 = arith.constant 0 : i32
    %c0_i32_1 = arith.constant 0 : i32
    return %c0_i32, %c0_i32_0 : i32, i32
  }
  func.func @transform_4(%arg0: i32) -> (i32, i32) {
    %c0_i32 = arith.constant 0 : i32
    %c0_i32_0 = arith.constant 0 : i32
    %c0_i32_1 = arith.constant 0 : i32
    return %c0_i32, %c0_i32_0 : i32, i32
  }
  func.func @transform_5(%arg0: i32) -> (i32, i32) {
    %c0_i32 = arith.constant 0 : i32
    %c0_i32_0 = arith.constant 0 : i32
    %c0_i32_1 = arith.constant 0 : i32
    return %c0_i32, %c0_i32_0 : i32, i32
  }
  func.func @transform_6(%arg0: i32) -> (i32, i32) {
    %c0_i32 = arith.constant 0 : i32
    %c0_i32_0 = arith.constant 0 : i32
    %c0_i32_1 = arith.constant 0 : i32
    return %c0_i32, %c0_i32_0 : i32, i32
  }
  func.func @transform_7(%arg0: i32) -> (i32, i32) {
    %c0_i32 = arith.constant 0 : i32
    %c0_i32_0 = arith.constant 0 : i32
    %c0_i32_1 = arith.constant 0 : i32
    return %c0_i32, %c0_i32_0 : i32, i32
  }
  func.func @transform_8(%arg0: i32) -> (i32, i32) {
    %c0_i32 = arith.constant 0 : i32
    %c0_i32_0 = arith.constant 0 : i32
    return %arg0, %c0_i32 : i32, i32
  }
}

</mosaic_0001>

<bundles_post_ra>
// kernel: dsm_forward.1
= control target key start
LH: loop header
LB: loop body
LE: loop exit
PB: predicated region body
PF: predicated region fallthrough
CT: control target
= control target key end

     0   :  { %v387_v0 = vmov 0.0|0.0   ;;  %vm388_vm0 = vmmov 0   ;;  %v389_v3 = vmov 0.0   ;;  %vm39_vm1 = vcmask 130048   ;;  %s485_s1 = inlined_call_operand.vmem [shape: f32[16,32], index: 1, kind: input, shape index: {}]   ;;  %s486_s0 = inlined_call_operand.vmem [shape: f32[8,16], index: 0, kind: input, shape index: {}]   ;;  %s487_s3 = inlined_call_operand.vmem [shape: f32[32,32], index: 3, kind: input, shape index: {}]   ;;  %s488_s2 = inlined_call_operand.vmem [shape: f32[1,32], index: 2, kind: input, shape index: {}]   ;;  %s489_s5 = inlined_call_operand.vmem [shape: f32[32,128], index: 5, kind: input, shape index: {}]   ;;  %s490_s4 = inlined_call_operand.vmem [shape: f32[1,32], index: 4, kind: input, shape index: {}]   ;;  %s491_s6 = inlined_call_operand.vmem [shape: f32[1,128], index: 6, kind: input, shape index: {}]   ;;  %s492_s7 = inlined_call_operand.vmem [shape: f32[1,128], index: 7, kind: input, shape index: {}]   ;;  %s493_s8 = inlined_call_operand.vmem [shape: bf16[8,128], index: 8, kind: output, shape index: {}]  }
   0x1   :  { %367 = vmatprep.subr.bf16.mxu0 %v387_v0  ;;  %v30_v1 = vld [vmem:[%s485_s1] sm:$0xff]  ;;  %v31_v2 = vld [vmem:[%s485_s1 + $0x8] sm:$0xff]  ;;  %342 = vmatprep.mubr.msk.f32.mxu0 %vm388_vm0, %v389_v3  ;;  %v117_v9 = vld [vmem:[%s487_s3 + $0x10] sm:$0xff]  ;;  %vm126_vm2 = vcmask 261120   ;;  %v304_v38 = vlaneseq }
   0x2   :  { %v368_v4 = vpack.c.bf16 %v31_v2, %v30_v1  ;;  %370 = vmatprep.subr.bf16.mxu1 %v387_v0  ;;  %353 = vmatprep.mubr.msk.f32.mxu1 %vm388_vm0, %v389_v3  ;;  %v29_v5 = vld [vmem:[%s486_s0] sm:$0xff]  ;;  %v116_v7 = vld [vmem:[%s487_s3 + $0x8] sm:$0xff]  ;;  %v118_v10 = vld [vmem:[%s487_s3 + $0x18] sm:$0xff] }
   0x3   :  { %v115_v6 = vld [vmem:[%s487_s3] sm:$0xff]  ;;  %v374_v11 = vpack.c.bf16 %v118_v10, %v117_v9  ;;  %v203_v19 = vld [vmem:[%s489_s5 + $0x8] sm:$0xff]  ;;  %v204_v21 = vld [vmem:[%s489_s5 + $0x10] sm:$0xff]  ;;  %v305_v42 = vand.u32 127, %v304_v38 }
   0x4   :  { %369 = vmatpush3.bf16.msra.mxu0 %v368_v4  ;;  %v371_v8 = vpack.c.bf16 %v116_v7, %v115_v6  ;;  %v316_v12 = vld [vmem:[%s488_s2] ss:$0 sm:$0xff]  ;;  %v205_v22 = vld [vmem:[%s489_s5 + $0x18] sm:$0xff] }
   0x5   :  { %376 = vmatprep.subr.bf16.mxu0 %v387_v0  ;;  %v202_v18 = vld [vmem:[%s489_s5] sm:$0xff]  ;;  %v380_v23 = vpack.c.bf16 %v205_v22, %v204_v21  ;;  %vm306_vm4 = vcmp.ge.s32.totalorder %v305_v42, 16 }
   0x6   :  { %372 = vmatpush3.bf16.msra.mxu1 %v371_v8  ;;  %v377_v20 = vpack.c.bf16 %v203_v19, %v202_v18  ;;  %v318_v24 = vld [vmem:[%s490_s4] ss:$0 sm:$0xff] }
   0x7   :  { %343 = vmatmul.mubr.msk.f32.vlgmr.msra.gmra.mrb[0].mxu0 %vm39_vm1, %v29_v5  ;;  %373 = vmatprep.subr.bf16.mxu1 %v387_v0  ;;  %v320_v30 = vld [vmem:[%s491_s6] ss:$0 sm:$0xff] }
   0x8   :  { %364 = vmatprep.mubr.msk.f32.mxu0 %vm388_vm0, %v389_v3  ;;  %378 = vmatpush3.bf16.msra.mxu0 %v377_v20  ;;  %v323_v40 = vld [vmem:[%s492_s7] ss:$0 sm:$0xff] }
   0x9   :  { %379 = vmatprep.subr.bf16.mxu0 %v387_v0 }
   0xa   :  { %375 = vmatpush3.bf16.msra.mxu1 %v374_v11 }
   0xc   :  { %381 = vmatpush3.bf16.msra.mxu0 %v380_v23 }
  0xda   :  { %v109_v13 = vpop.f32.mrb[0].mxu0 }
  0xdb   :  { %v110_v14 = vadd.f32 %v316_v12, %v109_v13  ;;  %v344_v15 = vpop.f32.mrb[1].mxu0 }
  0xdd   :  { %v113_v16 = vmax.f32 %v110_v14, 0.0 }
  0xdf   :  { %v114_v17 = vmin.f32 %v113_v16, 6.0 }
  0xe1   :  { %354 = vmatmul.mubr.msk.f32.vlgmr.msra.gmra.mrb[0].mxu1 %vm126_vm2, %v114_v17 }
 0x1b4   :  { %v196_v25 = vpop.f32.mrb[0].mxu1 }
 0x1b5   :  { %v197_v26 = vadd.f32 %v318_v24, %v196_v25  ;;  %v355_v27 = vpop.f32.mrb[1].mxu1 }
 0x1b7   :  { %v200_v28 = vmax.f32 %v197_v26, 0.0 }
 0x1b9   :  { %v201_v29 = vmin.f32 %v200_v28, 6.0 }
 0x1bb   :  { %365 = vmatmul.mubr.msk.f32.vlgmr.msra.gmra.mrb[2].mxu0 %vm126_vm2, %v201_v29 }
 0x28e   :  { %v283_v31 = vpop.f32.mrb[2].mxu0 }
 0x28f   :  { %v284_v32 = vadd.f32 %v320_v30, %v283_v31  ;;  %v366_v33 = vpop.f32.mrb[3].mxu0 }
 0x291   :  { %v288_v34 = vmin.f32 %v284_v32, 0.0  ;;  %vm287_vm3 = vcmp.gt.f32.partialorder %v284_v32, 0.0 }
 0x293   :  { %v289_v35 = vmul.f32 1.442695, %v288_v34 }
 0x295   :  { %385 = vpow2.f32 %v289_v35 }
 0x29f   :  { %v386_v36 = vpop.eup %385 }
 0x2a0   :  { %v322_v37 = vadd.f32 -1.0, %v386_v36 }
 0x2a2   :  { %v292_v39 = vmul.f32 1.6732632, %v322_v37 }
 0x2a4   :  { %v293_v41 = vsel %vm287_vm3, %v284_v32, %v292_v39 }
 0x2a5   :  { %v294_v43 = vmul.f32 1.050701, %v293_v41 }
 0x2a7   :  { %v301_v44 = vadd.f32 %v323_v40, %v294_v43 }
 0x2a9   :  { %v324_v45 = vclamps-f32 %v301_v44, 10.0 }
 0x2ab   :  { %v309_v46 = vsel %vm306_vm4, %v284_v32, %v324_v45 }
 0x2ac   :  { %v310_v47 = vpack.c.bf16 %v309_v46, %v309_v46 }
 0x2ae   :  { %311 = vst [vmem:[%s493_s8] sm:$0xf] %v310_v47 }

</bundles_post_ra>
